<compile_context>
chip_gen: v5e
topology: v5e:2x2
jax: 0.10.0
libtpu: 0.0.40
codegen_flags: <defaults>
</compile_context>

<pallas_src>
import functools

import jax
import jax.numpy as jnp
from jax import lax
from jax.experimental import pallas as pl
from jax.experimental.pallas import tpu as pltpu

HIDDEN = 32


def _pick_compute_dtype():
    """bf16 elementwise / matmul inputs on bf16-native chips (v6e, v7x); f32 otherwise."""
    try:
        kind = jax.devices()[0].device_kind.lower()
    except Exception:
        return jnp.float32
    if any(tag in kind for tag in ("v6", "v7", "6e", "7x")):
        return jnp.bfloat16
    return jnp.float32


def _mlp_kernel(x_ref, w1_ref, b1_ref, w2_ref, b2_ref, w3_ref, b3_ref, o_ref,
                *, chunk, n_chunks, compute_dtype):
    """One [1, TB] batch tile of the fused MLP; batch on the lane axis.

    x_ref : [1, TB]      input (n_inputs == 1), batch on lanes, f32
    w1_ref: [H, chunk]   linear1.weight[:, 0] pre-broadcast over lanes (compute dtype)
    b1_ref: [H, chunk]   linear1.bias pre-broadcast (compute dtype)
    w2_ref: [H, H]       linear2.weight (out, in) (compute dtype)
    b2_ref: [H, chunk]   linear2.bias pre-broadcast (f32)
    w3_ref: [H, chunk]   linear3.weight[0, :] pre-broadcast (f32)
    b3_ref: [1]          linear3.bias scalar in SMEM (f32)
    o_ref : [1, TB]      output (n_outputs == 1), batch on lanes, f32
    """
    b3 = b3_ref[0]

    def body(c, carry):
        start = pl.multiple_of(c * chunk, chunk)
        xs = x_ref[:, pl.ds(start, chunk)].astype(compute_dtype)          # [1, chunk]
        # Layer 1 (K=1): outer product on the VPU, bias + ReLU fused. No MXU.
        h1 = jnp.maximum(w1_ref[...] * xs + b1_ref[...], 0.0)             # [H, chunk]
        # Layer 2: the only real matmul -> MXU, f32 accumulation.
        h2 = jnp.dot(w2_ref[...], h1, preferred_element_type=jnp.float32)
        h2 = jnp.maximum(h2 + b2_ref[...], 0.0)                           # [H, chunk] f32
        # Layer 3 (N=1): elementwise multiply + sublane reduce. No MXU.
        y = jnp.sum(h2 * w3_ref[...], axis=0, keepdims=True) + b3         # [1, chunk]
        o_ref[:, pl.ds(start, chunk)] = y.astype(o_ref.dtype)
        return carry

    lax.fori_loop(0, n_chunks, body, 0, unroll=min(n_chunks, 8))


def simple_nn_forward(x, params, *, batch_tile=16384, compute_dtype=None):
    """x: [B, 1] float32; params in PyTorch layout (see init_params). Returns [B, 1] f32."""
    assert x.ndim == 2 and x.shape[1] == 1, "kernel specialized for n_inputs == 1"
    assert batch_tile % 128 == 0
    B = x.shape[0]
    H = HIDDEN
    if compute_dtype is None:
        compute_dtype = _pick_compute_dtype()

    # Batch onto the lane axis.  Reshape is free; pad only to a multiple of 128 lanes
    # (no pad-to-tile copy; Pallas masks the ragged last grid block's writeback).
    x_lane = x.astype(jnp.float32).reshape(1, B)
    B128 = pl.cdiv(B, 128) * 128
    if B128 != B:
        x_lane = jnp.pad(x_lane, ((0, 0), (0, B128 - B)))

    # Batch-tile selection: as large as allowed (amortizes per-grid-step fixed cost),
    # but split to >= 2 tiles whenever possible so v7x megacore can use both cores.
    TB = min(batch_tile, B128)
    if pl.cdiv(B128, TB) == 1 and B128 >= 2 * 128:
        TB = pl.cdiv(B128 // 2, 128) * 128
    grid_n = pl.cdiv(B128, TB)

    # In-kernel lane-chunk size: caps [H, chunk] intermediates at ~8 vregs (f32) so
    # nothing spills; must divide TB (TB is always a multiple of 128).
    chunk = 256 if TB % 256 == 0 else 128
    n_chunks = TB // chunk

    # Pre-broadcast the tiny weights to lane width in the wrapper (a few KiB of
    # VMEM-resident data) so per-chunk work has no [H,1]->[H,chunk] splats.
    w1 = params["w1"].astype(jnp.float32)   # [H, 1]
    b1 = params["b1"].astype(jnp.float32)   # [H]
    w2 = params["w2"].astype(jnp.float32)   # [H, H]
    b2 = params["b2"].astype(jnp.float32)   # [H]
    w3 = params["w3"].astype(jnp.float32)   # [1, H]
    b3 = params["b3"].astype(jnp.float32)   # [1]

    w1b = jnp.broadcast_to(w1.reshape(H, 1), (H, chunk)).astype(compute_dtype)
    b1b = jnp.broadcast_to(b1.reshape(H, 1), (H, chunk)).astype(compute_dtype)
    w2k = w2.astype(compute_dtype)
    b2b = jnp.broadcast_to(b2.reshape(H, 1), (H, chunk))     # f32 (post-matmul math)
    w3b = jnp.broadcast_to(w3.reshape(H, 1), (H, chunk))     # f32 (layer-3 reduce)
    b3s = b3.reshape((1,))                                    # f32 scalar -> SMEM

    kernel = functools.partial(_mlp_kernel, chunk=chunk, n_chunks=n_chunks,
                               compute_dtype=compute_dtype)

    def const_spec(shape):
        # Full-array block, constant index_map -> DMA'd once, VMEM-resident for all tiles.
        return pl.BlockSpec(shape, lambda i: (0, 0))

    out = pl.pallas_call(
        kernel,
        out_shape=jax.ShapeDtypeStruct((1, B128), jnp.float32),
        grid=(grid_n,),
        in_specs=[
            pl.BlockSpec((1, TB), lambda i: (0, i)),             # x tile (lane-dense)
            const_spec((H, chunk)),                               # w1 (pre-broadcast)
            const_spec((H, chunk)),                               # b1
            const_spec((H, H)),                                   # w2
            const_spec((H, chunk)),                               # b2
            const_spec((H, chunk)),                               # w3
            pl.BlockSpec(memory_space=pltpu.MemorySpace.SMEM),    # b3 scalar
        ],
        out_specs=pl.BlockSpec((1, TB), lambda i: (0, i)),        # lane-dense output
        compiler_params=pltpu.CompilerParams(dimension_semantics=("parallel",)),
    )(x_lane, w1b, b1b, w2k, b2b, w3b, b3s)

    return out[0, :B].reshape(B, 1)


def init_params(key, hidden=HIDDEN):
    """PyTorch nn.Linear-style U(-1/sqrt(fan_in), 1/sqrt(fan_in)) init, PyTorch layout."""
    ks = jax.random.split(key, 6)

    def uni(k, shape, fan_in):
        bound = 1.0 / jnp.sqrt(jnp.float32(fan_in))
        return jax.random.uniform(k, shape, jnp.float32, -bound, bound)

    return {
        "w1": uni(ks[0], (hidden, 1), 1),          # linear1.weight [out=H, in=1]
        "b1": uni(ks[1], (hidden,), 1),            # linear1.bias
        "w2": uni(ks[2], (hidden, hidden), hidden),  # linear2.weight [out, in]
        "b2": uni(ks[3], (hidden,), hidden),       # linear2.bias
        "w3": uni(ks[4], (1, hidden), hidden),     # linear3.weight [out=1, in=H]
        "b3": uni(ks[5], (1,), hidden),            # linear3.bias
    }


if __name__ == "__main__":
    key = jax.random.PRNGKey(0)
    k_x, k_p = jax.random.split(key)

    # sin_estimate setup: scalar regression, n_inputs = n_outputs = 1.
    B = 8
    x = jax.random.uniform(k_x, (B, 1), jnp.float32, -3.14, 3.14)
    params = init_params(k_p)

    compute_dtype = _pick_compute_dtype()
    y = simple_nn_forward(x, params, compute_dtype=compute_dtype)
    y = jax.block_until_ready(y)

    # Pure-JAX reference in standard PyTorch layout / math (f32).
    h1 = jnp.maximum(x @ params["w1"].T + params["b1"], 0.0)    # [B, 32]
    h2 = jnp.maximum(h1 @ params["w2"].T + params["b2"], 0.0)   # [B, 32]
    y_ref = h2 @ params["w3"].T + params["b3"]                  # [B, 1]

    # f32 path is (near-)exact; bf16 path (v6e/v7x) keeps f32 accumulation so errors
    # stay far below the loose tolerance for this sin-regression-scale network.
    tol = 1e-5 if compute_dtype == jnp.float32 else 3e-2
    assert y.shape == (B, 1)
    assert jnp.allclose(y, y_ref, atol=tol, rtol=tol), (
        f"max abs err {jnp.max(jnp.abs(y - y_ref))}")

    print("KERNEL_OK")
</pallas_src>

<mosaic_0001>
module attributes {stable_mosaic.version = 11 : i64} {
  func.func @_mlp_kernel(%arg0: i32, %arg1: memref<1x128xf32, #tpu.memory_space<vmem>>, %arg2: memref<32x128xf32, #tpu.memory_space<vmem>>, %arg3: memref<32x128xf32, #tpu.memory_space<vmem>>, %arg4: memref<32x32xf32, #tpu.memory_space<vmem>>, %arg5: memref<32x128xf32, #tpu.memory_space<vmem>>, %arg6: memref<32x128xf32, #tpu.memory_space<vmem>>, %arg7: memref<1xf32, #tpu.memory_space<smem>>, %arg8: memref<1x128xf32, #tpu.memory_space<vmem>>) attributes {dimension_semantics = [#tpu.dimension_semantics<parallel>], iteration_bounds = array<i64: 1>, scalar_prefetch = 0 : i64, scratch_operands = 0 : i64, tpu.core_type = #tpu.core_type<tc>, window_params = [{transform_indices = @transform_0, window_bounds = array<i64: 1, 128>}, {pipeline_mode = #tpu.pipeline_mode<synchronous>, transform_indices = @transform_1, window_bounds = array<i64: 32, 128>}, {pipeline_mode = #tpu.pipeline_mode<synchronous>, transform_indices = @transform_2, window_bounds = array<i64: 32, 128>}, {pipeline_mode = #tpu.pipeline_mode<synchronous>, transform_indices = @transform_3, window_bounds = array<i64: 32, 32>}, {pipeline_mode = #tpu.pipeline_mode<synchronous>, transform_indices = @transform_4, window_bounds = array<i64: 32, 128>}, {pipeline_mode = #tpu.pipeline_mode<synchronous>, transform_indices = @transform_5, window_bounds = array<i64: 32, 128>}, {transform_indices = @transform_6, window_bounds = array<i64: 1>}, {transform_indices = @transform_7, window_bounds = array<i64: 1, 128>}]} {
    %c0 = arith.constant 0 : index
    %0 = memref.load %arg7[%c0] : memref<1xf32, #tpu.memory_space<smem>>
    %c0_i32 = arith.constant 0 : i32
    %c128_i32 = arith.constant 128 : i32
    %1 = arith.muli %c0_i32, %c128_i32 : i32
    %2 = tpu.assume_multiple %1, 128 : i32
    %c0_0 = arith.constant 0 : index
    %3 = arith.index_cast %2 : i32 to index
    %4 = vector.load %arg1[%c0_0, %3] : memref<1x128xf32, #tpu.memory_space<vmem>>, vector<1x128xf32>
    %c0_1 = arith.constant 0 : index
    %c0_2 = arith.constant 0 : index
    %5 = vector.load %arg2[%c0_1, %c0_2] : memref<32x128xf32, #tpu.memory_space<vmem>>, vector<32x128xf32>
    %6 = vector.broadcast %4 : vector<1x128xf32> to vector<32x128xf32>
    %7 = arith.mulf %5, %6 : vector<32x128xf32>
    %c0_3 = arith.constant 0 : index
    %c0_4 = arith.constant 0 : index
    %8 = vector.load %arg3[%c0_3, %c0_4] : memref<32x128xf32, #tpu.memory_space<vmem>>, vector<32x128xf32>
    %9 = arith.addf %7, %8 : vector<32x128xf32>
    %cst = arith.constant 0.000000e+00 : f32
    %10 = vector.broadcast %cst : f32 to vector<32x128xf32>
    %11 = arith.maximumf %9, %10 : vector<32x128xf32>
    %c0_5 = arith.constant 0 : index
    %c0_6 = arith.constant 0 : index
    %12 = vector.load %arg4[%c0_5, %c0_6] : memref<32x32xf32, #tpu.memory_space<vmem>>, vector<32x32xf32>
    %cst_7 = arith.constant dense<0.000000e+00> : vector<32x128xf32>
    %13 = tpu.matmul %12, %11, %cst_7 {dimension_numbers = #tpu.dot_dimension_numbers<[1], [0], [0], [1], [0, 0, 1, 1], [], []>} : vector<32x32xf32>, vector<32x128xf32>, vector<32x128xf32> -> vector<32x128xf32>
    %c0_8 = arith.constant 0 : index
    %c0_9 = arith.constant 0 : index
    %14 = vector.load %arg5[%c0_8, %c0_9] : memref<32x128xf32, #tpu.memory_space<vmem>>, vector<32x128xf32>
    %15 = arith.addf %13, %14 : vector<32x128xf32>
    %cst_10 = arith.constant 0.000000e+00 : f32
    %16 = vector.broadcast %cst_10 : f32 to vector<32x128xf32>
    %17 = arith.maximumf %15, %16 : vector<32x128xf32>
    %c0_11 = arith.constant 0 : index
    %c0_12 = arith.constant 0 : index
    %18 = vector.load %arg6[%c0_11, %c0_12] : memref<32x128xf32, #tpu.memory_space<vmem>>, vector<32x128xf32>
    %19 = arith.mulf %17, %18 : vector<32x128xf32>
    %cst_13 = arith.constant dense<0.000000e+00> : vector<128xf32>
    %20 = vector.multi_reduction <add>, %19, %cst_13 [0] : vector<32x128xf32> to vector<128xf32>
    %21 = vector.shape_cast %20 : vector<128xf32> to vector<1x128xf32>
    %22 = vector.broadcast %0 : f32 to vector<1x128xf32>
    %23 = arith.addf %21, %22 : vector<1x128xf32>
    %c0_14 = arith.constant 0 : index
    %24 = arith.index_cast %2 : i32 to index
    %25 = vector.load %arg8[%c0_14, %24] : memref<1x128xf32, #tpu.memory_space<vmem>>, vector<1x128xf32>
    tpu.vector_store %arg8[%c0_14, %24], %23 {strides = array<i32>} : memref<1x128xf32, #tpu.memory_space<vmem>>, vector<1x128xf32>,
    %c1_i32 = arith.constant 1 : i32
    return
  }
  func.func @transform_0(%arg0: i32) -> (i32, i32) {
    %c0_i32 = arith.constant 0 : i32
    %c0_i32_0 = arith.constant 0 : i32
    return %c0_i32, %arg0 : i32, i32
  }
  func.func @transform_1(%arg0: i32) -> (i32, i32) {
    %c0_i32 = arith.constant 0 : i32
    %c0_i32_0 = arith.constant 0 : i32
    %c0_i32_1 = arith.constant 0 : i32
    return %c0_i32, %c0_i32_0 : i32, i32
  }
  func.func @transform_2(%arg0: i32) -> (i32, i32) {
    %c0_i32 = arith.constant 0 : i32
    %c0_i32_0 = arith.constant 0 : i32
    %c0_i32_1 = arith.constant 0 : i32
    return %c0_i32, %c0_i32_0 : i32, i32
  }
  func.func @transform_3(%arg0: i32) -> (i32, i32) {
    %c0_i32 = arith.constant 0 : i32
    %c0_i32_0 = arith.constant 0 : i32
    %c0_i32_1 = arith.constant 0 : i32
    return %c0_i32, %c0_i32_0 : i32, i32
  }
  func.func @transform_4(%arg0: i32) -> (i32, i32) {
    %c0_i32 = arith.constant 0 : i32
    %c0_i32_0 = arith.constant 0 : i32
    %c0_i32_1 = arith.constant 0 : i32
    return %c0_i32, %c0_i32_0 : i32, i32
  }
  func.func @transform_5(%arg0: i32) -> (i32, i32) {
    %c0_i32 = arith.constant 0 : i32
    %c0_i32_0 = arith.constant 0 : i32
    %c0_i32_1 = arith.constant 0 : i32
    return %c0_i32, %c0_i32_0 : i32, i32
  }
  func.func @transform_6(%arg0: i32) -> i32 {
    %c0_i32 = arith.constant 0 : i32
    %c0_i32_0 = arith.constant 0 : i32
    return %c0_i32 : i32
  }
  func.func @transform_7(%arg0: i32) -> (i32, i32) {
    %c0_i32 = arith.constant 0 : i32
    %c0_i32_0 = arith.constant 0 : i32
    return %c0_i32, %arg0 : i32, i32
  }
}

</mosaic_0001>

<bundles_post_ra>
// kernel: tpu_custom_call.1
= control target key start
LH: loop header
LB: loop body
LE: loop exit
PB: predicated region body
PF: predicated region fallthrough
CT: control target
= control target key end

     0   :  { %13 = vsyncpa [#allocation4], 0  ;;  %s473_s0 = inlined_call_operand.vmem [shape: f32[1,128], index: 0, kind: input, shape index: {}]   ;;  %s474_s1 = inlined_call_operand.hbm [shape: f32[32,128], index: 1, kind: input, shape index: {}]   ;;  %s475_s2 = inlined_call_operand.hbm [shape: f32[32,128], index: 2, kind: input, shape index: {}]   ;;  %s476_s3 = inlined_call_operand.hbm [shape: f32[32,32], index: 3, kind: input, shape index: {}]   ;;  %s477_s4 = inlined_call_operand.hbm [shape: f32[32,128], index: 4, kind: input, shape index: {}]   ;;  %s478_s5 = inlined_call_operand.hbm [shape: f32[32,128], index: 5, kind: input, shape index: {}]   ;;  %s479_s6 = inlined_call_operand.<no memory space> [shape: f32[1], index: 6, kind: input, shape index: {}]   ;;  %s480_s7 = inlined_call_operand.hbm [shape: f32[1,128], index: 7, kind: output, shape index: {}]  }
   0x1   :  { %14 = vsyncpa [#allocation7], 0 }
   0x2   :  { %15 = vsyncpa [#allocation10], 0 }
   0x3   :  { %16 = vsyncpa [#allocation5], 0  ;;  %s36_s26 = sshll.u32 %s475_s2, 4  ;;  %s401_s27 = smov [#allocation6]   ;;  %s37_s26 = int_to_ptr.hbm [resolvable:$true] %s36_s26 }
   0x4   :  { %s38_s28 = sshll.u32 %s401_s27, 4  ;;  %s62_s8 = sshll.u32 %s477_s4, 4  ;;  %s39_s28 = int_to_ptr.vmem [resolvable:$true] %s38_s28  ;;  %s63_s8 = int_to_ptr.hbm [resolvable:$true] %s62_s8 }
   0x5   :  { %s402_s9 = smov 128   ;;  %s403_s10 = smov 8  }
   0x6   :  { %44 = dma.hbm_to_vmem [thread:$0]  %s37_s26, 512, %s39_s28, [#allocation7], %s402_s9, %s402_s9, %s403_s10  }
   0x7   :  { %s404_s11 = smov [#allocation9]   ;;  %s23_s15 = sshll.u32 %s474_s1, 4  ;;  %s24_s15 = int_to_ptr.hbm [resolvable:$true] %s23_s15 }
   0x8   :  { %s64_s12 = sshll.u32 %s404_s11, 4  ;;  %s49_s17 = sshll.u32 %s476_s3, 4  ;;  %s65_s12 = int_to_ptr.vmem [resolvable:$true] %s64_s12  ;;  %s50_s17 = int_to_ptr.hbm [resolvable:$true] %s49_s17 }
   0x9   :  { %70 = dma.hbm_to_vmem [thread:$0]  %s63_s8, 512, %s65_s12, [#allocation10], %s402_s9, %s402_s9, %s403_s10  }
   0xa   :  { %s405_s18 = smov [#allocation3]   ;;  %s406_s4 = smov [#allocation8]  }
   0xb   :  { %s25_s19 = sshll.u32 %s405_s18, 4  ;;  %s51_s20 = sshll.u32 %s406_s4, 4  ;;  %s26_s19 = int_to_ptr.vmem [resolvable:$true] %s25_s19  ;;  %s52_s20 = int_to_ptr.vmem [resolvable:$true] %s51_s20 }
   0xc   :  { %31 = dma.hbm_to_vmem [thread:$0]  %s24_s15, 512, %s26_s19, [#allocation4], %s402_s9, %s402_s9, %s403_s10  }
   0xd   :  { %s75_s23 = sshll.u32 %s478_s5, 4  ;;  %s407_s1 = smov [#allocation11]   ;;  %s76_s23 = int_to_ptr.hbm [resolvable:$true] %s75_s23 }
   0xe   :  { %57 = dma.hbm_to_vmem [thread:$0]  %s50_s17, 512, %s52_s20, [#allocation7], %s402_s9, %s402_s9, %s403_s10  }
   0xf   :  { %s77_s24 = sshll.u32 %s407_s1, 4  ;;  %s78_s24 = int_to_ptr.vmem [resolvable:$true] %s77_s24 }
  0x10   :  { %83 = dma.hbm_to_vmem [thread:$0]  %s76_s23, 512, %s78_s24, [#allocation10], %s402_s9, %s402_s9, %s403_s10  }
  0x11   :  { %393 = dma.done.wait [#allocation4], 512  }
  0x12   :  { %394 = vsyncadd [#allocation4], 4294966784 }
  0x13   :  { %395 = dma.done.wait [#allocation7], 1024  }
  0x14   :  { %396 = vsyncadd [#allocation7], 4294966272 }
  0x15   :  { %397 = dma.done.wait [#allocation10], 1024  }
  0x16   :  { %398 = vsyncadd [#allocation10], 4294966272  ;;  %v111_v0 = vld [vmem:[#allocation3 + $0x18] sm:$0xff]  ;;  %v248_v1 = vld [vmem:[%s473_s0] ss:$0 sm:$0xff]  ;;  %vm139_vm0 = vcmask 261120   ;;  %v202_v57 = vstv %s479_s6 }
  0x17   :  { %v122_v2 = vld [vmem:[#allocation6 + $0x18] sm:$0xff]  ;;  %v110_v3 = vld [vmem:[#allocation3 + $0x10] sm:$0xff]  ;;  %v118_v5 = vmul.f32 %v248_v1, %v111_v0  ;;  %v109_v7 = vld [vmem:[#allocation3 + $0x8] sm:$0xff]  ;;  %s408_s26 = smov [#allocation12]   ;;  %s212_s30 = sshll.u32 %s480_s7, 4  ;;  %s213_s30 = int_to_ptr.hbm [resolvable:$true] %s212_s30 }
  0x18   :  { %v121_v4 = vld [vmem:[#allocation6 + $0x10] sm:$0xff]  ;;  %v117_v6 = vmul.f32 %v248_v1, %v110_v3  ;;  %v120_v8 = vld [vmem:[#allocation6 + $0x8] sm:$0xff]  ;;  %v108_v9 = vld [vmem:[#allocation3] sm:$0xff]  ;;  %v116_v10 = vmul.f32 %v248_v1, %v109_v7  ;;  %s210_s27 = sshll.u32 %s408_s26, 4  ;;  %s211_s27 = int_to_ptr.vmem [resolvable:$true] %s210_s27 }
  0x19   :  { %v115_v11 = vmul.f32 %v248_v1, %v108_v9  ;;  %v119_v12 = vld [vmem:[#allocation6] sm:$0xff]  ;;  %v126_v13 = vadd.f32 %v122_v2, %v118_v5  ;;  %v133_v21 = vld [vmem:[#allocation8 + $0x10] sm:$0xff]  ;;  %v134_v22 = vld [vmem:[#allocation8 + $0x18] sm:$0xff] }
  0x1a   :  { %v125_v14 = vadd.f32 %v121_v4, %v117_v6  ;;  %v124_v15 = vadd.f32 %v120_v8, %v116_v10  ;;  %v131_v23 = vld [vmem:[#allocation8] sm:$0xff]  ;;  %v132_v24 = vld [vmem:[#allocation8 + $0x8] sm:$0xff]  ;;  %v137_v33 = vld [vmem:[#allocation9 + $0x10] sm:$0xff] }
  0x1b   :  { %v130_v16 = vmax.f32 %v126_v13, 0.0  ;;  %v123_v18 = vadd.f32 %v119_v12, %v115_v11  ;;  %v135_v25 = vld [vmem:[#allocation9] sm:$0xff]  ;;  %v136_v26 = vld [vmem:[#allocation9 + $0x8] sm:$0xff]  ;;  %v138_v34 = vld [vmem:[#allocation9 + $0x18] sm:$0xff] }
  0x1c   :  { %v129_v17 = vmax.f32 %v125_v14, 0.0  ;;  %v128_v19 = vmax.f32 %v124_v15, 0.0  ;;  %v185_v30 = vld [vmem:[#allocation11] sm:$0xff]  ;;  %v186_v32 = vld [vmem:[#allocation11 + $0x8] sm:$0xff]  ;;  %v187_v43 = vld [vmem:[#allocation11 + $0x10] sm:$0xff] }
  0x1d   :  { %229 = vmatpush.msra.mxu2 %v130_v16  ;;  %230 = vmatpush.msra.mxu3 %v130_v16  ;;  %v127_v20 = vmax.f32 %v123_v18, 0.0  ;;  %v188_v44 = vld [vmem:[#allocation11 + $0x18] sm:$0xff] }
  0x1e   :  { %164 = vmatpush.msra.mxu0 %v130_v16  ;;  %228 = vmatpush.msra.mxu1 %v130_v16 }
  0x1f   :  { %232 = vmatpush.msra.mxu2 %v129_v17  ;;  %233 = vmatpush.msra.mxu3 %v129_v17 }
  0x20   :  { %165 = vmatpush.msra.mxu0 %v129_v17  ;;  %231 = vmatpush.msra.mxu1 %v129_v17 }
  0x21   :  { %235 = vmatpush.msra.mxu2 %v128_v19  ;;  %236 = vmatpush.msra.mxu3 %v128_v19 }
  0x22   :  { %166 = vmatpush.msra.mxu0 %v128_v19  ;;  %234 = vmatpush.msra.mxu1 %v128_v19 }
  0x23   :  { %238 = vmatpush.msra.mxu2 %v127_v20  ;;  %239 = vmatpush.msra.mxu3 %v127_v20 }
  0x24   :  { %226 = vmatmul.msk.f32.vlgmr.msra.gmra.mxu2 %vm139_vm0, %v133_v21  ;;  %227 = vmatmul.msk.f32.vlgmr.msra.gmra.mxu3 %vm139_vm0, %v134_v22 }
  0x25   :  { %167 = vmatpush.msra.mxu0 %v127_v20  ;;  %237 = vmatpush.msra.mxu1 %v127_v20 }
  0x26   :  { %224 = vmatmul.msk.f32.vlgmr.msra.gmra.mxu0 %vm139_vm0, %v131_v23  ;;  %225 = vmatmul.msk.f32.vlgmr.msra.gmra.mxu1 %vm139_vm0, %v132_v24 }
  0xa3   :  { %v169_v27 = vpop.f32.mrf.mxu0  ;;  %v172_v28 = vpop.f32.mrf.mxu1 }
  0xa4   :  { %v170_v29 = vadd.f32 %v169_v27, %v135_v25  ;;  %v173_v31 = vadd.f32 %v172_v28, %v136_v26 }
  0xa6   :  { %v181_v35 = vmax.f32 %v170_v29, 0.0  ;;  %v182_v36 = vmax.f32 %v173_v31, 0.0 }
  0xa7   :  { %v175_v37 = vpop.f32.mrf.mxu2  ;;  %v178_v38 = vpop.f32.mrf.mxu3 }
  0xa8   :  { %v189_v39 = vmul.f32 %v185_v30, %v181_v35  ;;  %v190_v40 = vmul.f32 %v186_v32, %v182_v36  ;;  %v176_v41 = vadd.f32 %v175_v37, %v137_v33  ;;  %v179_v42 = vadd.f32 %v178_v38, %v138_v34 }
  0xaa   :  { %v193_v45 = vadd.f32 %v190_v40, %v189_v39  ;;  %v183_v46 = vmax.f32 %v176_v41, 0.0  ;;  %v184_v47 = vmax.f32 %v179_v42, 0.0 }
  0xac   :  { %v191_v48 = vmul.f32 %v187_v43, %v183_v46  ;;  %v192_v49 = vmul.f32 %v188_v44, %v184_v47 }
  0xae   :  { %v194_v50 = vadd.f32 %v193_v45, %v191_v48 }
  0xb0   :  { %v195_v51 = vadd.f32 %v194_v50, %v192_v49 }
  0xb2   :  { %v196_v52 = vrot.slane %v195_v51, 4 }
  0xb4   :  { %v197_v53 = vadd.f32 %v196_v52, %v195_v51 }
  0xb6   :  { %v198_v54 = vrot.slane %v197_v53, 2 }
  0xb8   :  { %v199_v55 = vadd.f32 %v198_v54, %v197_v53 }
  0xba   :  { %v200_v56 = vrot.slane %v199_v55, 1 }
  0xbc   :  { %v201_v58 = vadd.f32 %v200_v56, %v199_v55 }
  0xbe   :  { %v203_v59 = vadd.f32 %v202_v57, %v201_v58 }
  0xc0   :  { %204 = vst [vmem:[#allocation12] sm:$0x1] %v203_v59 }
  0xc1   :  { %215 = dma.vmem_to_hbm [thread:$0]  %s211_s27, 16, %s213_s30, [#allocation5]  }
  0xc2   :  { %399 = dma.done.wait [#allocation5], 16  }
  0xc3   :  { %400 = vsyncadd [#allocation5], 4294967280 }
  0xc4   :  { %220 = vsyncpa [#allocation4], 1 }
  0xc5   :  { %221 = vsyncpa [#allocation7], 1 }
  0xc6   :  { %222 = vsyncpa [#allocation10], 1 }
  0xc7   :  { %223 = vsyncpa [#allocation5], 1 }

</bundles_post_ra>
